<compile_context>
chip_gen: v7x
topology: tpu7x:2x2x1
jax: 0.10.0
libtpu: 0.0.40
codegen_flags: <defaults>
</compile_context>

<pallas_src>
import numpy as np
import jax
import jax.numpy as jnp
from jax.experimental import pallas as pl
from jax.experimental.pallas import tpu as pltpu

# ---- module hyperparameters (action_space.shape=(4,), latent_features=32) ----
ACTION_DIM = 4
LATENT = 32
NUM_LAYERS = 3

HID_PAD = 32       # hidden widths 13, 22 -> 32 lanes (weight/VMEM footprint only)
OUT_PAD = LATENT   # final output lanes == true width 32 (no lane padding)
MAX_BTILE = 4096   # max batch rows per grid step (<< VMEM limits even on v7x)


def layer_dims(in_features, out_features, num_layers):
    """Reproduce the integer-interpolated layer sizes from ActionEncoder.__init__."""
    dims = []
    for i in range(num_layers):
        in_ = int(in_features + (out_features - in_features) * i / num_layers)
        out_ = int(in_features + (out_features - in_features) * (i + 1) / num_layers)
        dims.append((in_, out_))
    return dims


def init_params(key, dims):
    """Deterministic nn.Linear-style init: U(-1/sqrt(fan_in), 1/sqrt(fan_in))."""
    params = []
    for (fan_in, fan_out) in dims:
        key, kw, kb = jax.random.split(key, 3)
        bound = 1.0 / np.sqrt(fan_in)
        w = jax.random.uniform(kw, (fan_out, fan_in), jnp.float32, -bound, bound)
        b = jax.random.uniform(kb, (fan_out,), jnp.float32, -bound, bound)
        params.append((w, b))
    return params


def pad_params(params):
    """Zero-pad weights/biases to the kernel's lane widths.

    Weights are stored transposed so the kernel computes y = x @ Wp + bp.
    Real widths 4->13->22->32 map to 4->32->32->32; zero padding keeps padded
    lanes exactly 0 through tanh, so the valid lanes match the reference.
    """
    in_pads = (ACTION_DIM, HID_PAD, HID_PAD)
    out_pads = (HID_PAD, HID_PAD, OUT_PAD)
    padded = []
    for (w, b), ip, op in zip(params, in_pads, out_pads):
        fan_out, fan_in = w.shape
        wp = jnp.zeros((ip, op), jnp.float32).at[:fan_in, :fan_out].set(w.T)
        bp = jnp.zeros((1, op), jnp.float32).at[0, :fan_out].set(b)
        padded.append((wp, bp))
    return padded


def mlp_kernel(x_ref, w0, b0, w1, b1, w2, b2, o_ref):
    h = x_ref[...]                                                                    # (BT, 4)
    h = jnp.tanh(jnp.dot(h, w0[...], preferred_element_type=jnp.float32) + b0[...])   # (BT, 32)
    h = jnp.tanh(jnp.dot(h, w1[...], preferred_element_type=jnp.float32) + b1[...])   # (BT, 32)
    h = jnp.tanh(jnp.dot(h, w2[...], preferred_element_type=jnp.float32) + b2[...])   # (BT, 32)
    o_ref[...] = h.astype(o_ref.dtype)


def _num_tensorcores():
    """Best-effort TensorCores-per-device (v7x: 2; v5e/v6e: 1). Defaults to 1."""
    try:
        info = pltpu.get_tpu_info()
        for attr in ("num_cores", "core_count", "num_tensorcores"):
            n = getattr(info, attr, None)
            if n:
                return int(n)
    except Exception:
        pass
    try:
        n = getattr(jax.devices()[0], "num_cores", None)
        if n:
            return int(n)
    except Exception:
        pass
    return 1


def _round_up(x, m):
    return ((x + m - 1) // m) * m


def _tile_plan(B, num_cores):
    """Balanced tiling: minimal row padding, >=2 steps only if >1 TensorCore."""
    b8 = _round_up(max(B, 1), 8)
    n_steps = -(-b8 // MAX_BTILE)                       # cdiv
    if num_cores > 1 and b8 > 8:
        n_steps = max(n_steps, 2)                       # balanced dual-TC split
    btile = _round_up(-(-b8 // n_steps), 8)
    b_pad = n_steps * btile
    return btile, b_pad


def action_encoder_forward(action, padded_params, num_cores=None):
    """action: (B, ACTION_DIM) float32 -> (B, LATENT) float32"""
    B = action.shape[0]
    if num_cores is None:
        num_cores = _num_tensorcores()
    btile, B_pad = _tile_plan(B, num_cores)

    x_pad = action.astype(jnp.float32)
    if B_pad != B:
        x_pad = jnp.pad(x_pad, ((0, B_pad - B), (0, 0)))  # rows only; features stay at 4

    (w0, b0), (w1, b1), (w2, b2) = padded_params

    def resident(shape):
        # Grid-invariant weight/bias tiles (constant index_map).
        return pl.BlockSpec(shape, lambda i: (0, 0))

    out = pl.pallas_call(
        mlp_kernel,
        out_shape=jax.ShapeDtypeStruct((B_pad, OUT_PAD), jnp.float32),
        grid=(B_pad // btile,),
        in_specs=[
            pl.BlockSpec((btile, ACTION_DIM), lambda i: (i, 0)),
            resident((ACTION_DIM, HID_PAD)), resident((1, HID_PAD)),
            resident((HID_PAD, HID_PAD)), resident((1, HID_PAD)),
            resident((HID_PAD, OUT_PAD)), resident((1, OUT_PAD)),
        ],
        out_specs=pl.BlockSpec((btile, OUT_PAD), lambda i: (i, 0)),
        compiler_params=pltpu.CompilerParams(
            dimension_semantics=("parallel",)),
    )(x_pad, w0, b0, w1, b1, w2, b2)

    return out[:B] if B_pad != B else out


def reference_forward(action, params):
    h = action
    for (w, b) in params:
        h = jnp.tanh(h @ w.T + b)
    return h


if __name__ == "__main__":
    key = jax.random.PRNGKey(0)
    k_param, k_in1, k_in2 = jax.random.split(key, 3)

    dims = layer_dims(ACTION_DIM, LATENT, NUM_LAYERS)  # [(4,13),(13,22),(22,32)]
    params = init_params(k_param, dims)
    padded_params = pad_params(params)

    # Small test batch (module-scale input).
    B = 2
    action = jax.random.uniform(k_in1, (B, ACTION_DIM), jnp.float32, -1.0, 1.0)
    out = jax.block_until_ready(action_encoder_forward(action, padded_params))
    ref = reference_forward(action, params)
    assert out.shape == (B, LATENT)
    np.testing.assert_allclose(np.asarray(out), np.asarray(ref), rtol=1e-5, atol=1e-5)

    # Larger batch, single-step path (auto core count).
    B2 = 1040
    action2 = jax.random.uniform(k_in2, (B2, ACTION_DIM), jnp.float32, -1.0, 1.0)
    out2 = jax.block_until_ready(action_encoder_forward(action2, padded_params))
    ref2 = reference_forward(action2, params)
    np.testing.assert_allclose(np.asarray(out2), np.asarray(ref2), rtol=1e-5, atol=1e-5)

    # Same batch forcing the balanced 2-step (dual-TensorCore style) grid path.
    out3 = jax.block_until_ready(
        action_encoder_forward(action2, padded_params, num_cores=2))
    np.testing.assert_allclose(np.asarray(out3), np.asarray(ref2), rtol=1e-5, atol=1e-5)

    print("KERNEL_OK")
</pallas_src>

<mosaic_0001>
module attributes {stable_mosaic.version = 11 : i64} {
  func.func @mlp_kernel(%arg0: i32, %arg1: memref<8x4xf32, #tpu.memory_space<vmem>>, %arg2: memref<4x32xf32, #tpu.memory_space<vmem>>, %arg3: memref<1x32xf32, #tpu.memory_space<vmem>>, %arg4: memref<32x32xf32, #tpu.memory_space<vmem>>, %arg5: memref<1x32xf32, #tpu.memory_space<vmem>>, %arg6: memref<32x32xf32, #tpu.memory_space<vmem>>, %arg7: memref<1x32xf32, #tpu.memory_space<vmem>>, %arg8: memref<8x32xf32, #tpu.memory_space<vmem>>) attributes {dimension_semantics = [#tpu.dimension_semantics<parallel>], iteration_bounds = array<i64: 1>, scalar_prefetch = 0 : i64, scratch_operands = 0 : i64, tpu.core_type = #tpu.core_type<tc>, window_params = [{transform_indices = @transform_0, window_bounds = array<i64: 8, 4>}, {pipeline_mode = #tpu.pipeline_mode<synchronous>, transform_indices = @transform_1, window_bounds = array<i64: 4, 32>}, {pipeline_mode = #tpu.pipeline_mode<synchronous>, transform_indices = @transform_2, window_bounds = array<i64: 1, 32>}, {pipeline_mode = #tpu.pipeline_mode<synchronous>, transform_indices = @transform_3, window_bounds = array<i64: 32, 32>}, {pipeline_mode = #tpu.pipeline_mode<synchronous>, transform_indices = @transform_4, window_bounds = array<i64: 1, 32>}, {pipeline_mode = #tpu.pipeline_mode<synchronous>, transform_indices = @transform_5, window_bounds = array<i64: 32, 32>}, {pipeline_mode = #tpu.pipeline_mode<synchronous>, transform_indices = @transform_6, window_bounds = array<i64: 1, 32>}, {transform_indices = @transform_7, window_bounds = array<i64: 8, 32>}]} {
    %c0 = arith.constant 0 : index
    %c0_0 = arith.constant 0 : index
    %0 = vector.load %arg1[%c0, %c0_0] : memref<8x4xf32, #tpu.memory_space<vmem>>, vector<8x4xf32>
    %c0_1 = arith.constant 0 : index
    %c0_2 = arith.constant 0 : index
    %1 = vector.load %arg2[%c0_1, %c0_2] : memref<4x32xf32, #tpu.memory_space<vmem>>, vector<4x32xf32>
    %cst = arith.constant dense<0.000000e+00> : vector<8x32xf32>
    %2 = tpu.matmul %0, %1, %cst {dimension_numbers = #tpu.dot_dimension_numbers<[1], [0], [0], [1], [0, 0, 1, 1], [], []>} : vector<8x4xf32>, vector<4x32xf32>, vector<8x32xf32> -> vector<8x32xf32>
    %c0_3 = arith.constant 0 : index
    %c0_4 = arith.constant 0 : index
    %3 = vector.load %arg3[%c0_3, %c0_4] : memref<1x32xf32, #tpu.memory_space<vmem>>, vector<1x32xf32>
    %4 = vector.broadcast %3 : vector<1x32xf32> to vector<8x32xf32>
    %5 = arith.addf %2, %4 : vector<8x32xf32>
    %6 = math.tanh %5 : vector<8x32xf32>
    %c0_5 = arith.constant 0 : index
    %c0_6 = arith.constant 0 : index
    %7 = vector.load %arg4[%c0_5, %c0_6] : memref<32x32xf32, #tpu.memory_space<vmem>>, vector<32x32xf32>
    %cst_7 = arith.constant dense<0.000000e+00> : vector<8x32xf32>
    %8 = tpu.matmul %6, %7, %cst_7 {dimension_numbers = #tpu.dot_dimension_numbers<[1], [0], [0], [1], [0, 0, 1, 1], [], []>} : vector<8x32xf32>, vector<32x32xf32>, vector<8x32xf32> -> vector<8x32xf32>
    %c0_8 = arith.constant 0 : index
    %c0_9 = arith.constant 0 : index
    %9 = vector.load %arg5[%c0_8, %c0_9] : memref<1x32xf32, #tpu.memory_space<vmem>>, vector<1x32xf32>
    %10 = vector.broadcast %9 : vector<1x32xf32> to vector<8x32xf32>
    %11 = arith.addf %8, %10 : vector<8x32xf32>
    %12 = math.tanh %11 : vector<8x32xf32>
    %c0_10 = arith.constant 0 : index
    %c0_11 = arith.constant 0 : index
    %13 = vector.load %arg6[%c0_10, %c0_11] : memref<32x32xf32, #tpu.memory_space<vmem>>, vector<32x32xf32>
    %cst_12 = arith.constant dense<0.000000e+00> : vector<8x32xf32>
    %14 = tpu.matmul %12, %13, %cst_12 {dimension_numbers = #tpu.dot_dimension_numbers<[1], [0], [0], [1], [0, 0, 1, 1], [], []>} : vector<8x32xf32>, vector<32x32xf32>, vector<8x32xf32> -> vector<8x32xf32>
    %c0_13 = arith.constant 0 : index
    %c0_14 = arith.constant 0 : index
    %15 = vector.load %arg7[%c0_13, %c0_14] : memref<1x32xf32, #tpu.memory_space<vmem>>, vector<1x32xf32>
    %16 = vector.broadcast %15 : vector<1x32xf32> to vector<8x32xf32>
    %17 = arith.addf %14, %16 : vector<8x32xf32>
    %18 = math.tanh %17 : vector<8x32xf32>
    %c0_15 = arith.constant 0 : index
    %c0_16 = arith.constant 0 : index
    %19 = vector.load %arg8[%c0_15, %c0_16] : memref<8x32xf32, #tpu.memory_space<vmem>>, vector<8x32xf32>
    tpu.vector_store %arg8[%c0_15, %c0_16], %18 {strides = array<i32>} : memref<8x32xf32, #tpu.memory_space<vmem>>, vector<8x32xf32>,
    return
  }
  func.func @transform_0(%arg0: i32) -> (i32, i32) {
    %c0_i32 = arith.constant 0 : i32
    %c0_i32_0 = arith.constant 0 : i32
    return %arg0, %c0_i32 : i32, i32
  }
  func.func @transform_1(%arg0: i32) -> (i32, i32) {
    %c0_i32 = arith.constant 0 : i32
    %c0_i32_0 = arith.constant 0 : i32
    %c0_i32_1 = arith.constant 0 : i32
    return %c0_i32, %c0_i32_0 : i32, i32
  }
  func.func @transform_2(%arg0: i32) -> (i32, i32) {
    %c0_i32 = arith.constant 0 : i32
    %c0_i32_0 = arith.constant 0 : i32
    %c0_i32_1 = arith.constant 0 : i32
    return %c0_i32, %c0_i32_0 : i32, i32
  }
  func.func @transform_3(%arg0: i32) -> (i32, i32) {
    %c0_i32 = arith.constant 0 : i32
    %c0_i32_0 = arith.constant 0 : i32
    %c0_i32_1 = arith.constant 0 : i32
    return %c0_i32, %c0_i32_0 : i32, i32
  }
  func.func @transform_4(%arg0: i32) -> (i32, i32) {
    %c0_i32 = arith.constant 0 : i32
    %c0_i32_0 = arith.constant 0 : i32
    %c0_i32_1 = arith.constant 0 : i32
    return %c0_i32, %c0_i32_0 : i32, i32
  }
  func.func @transform_5(%arg0: i32) -> (i32, i32) {
    %c0_i32 = arith.constant 0 : i32
    %c0_i32_0 = arith.constant 0 : i32
    %c0_i32_1 = arith.constant 0 : i32
    return %c0_i32, %c0_i32_0 : i32, i32
  }
  func.func @transform_6(%arg0: i32) -> (i32, i32) {
    %c0_i32 = arith.constant 0 : i32
    %c0_i32_0 = arith.constant 0 : i32
    %c0_i32_1 = arith.constant 0 : i32
    return %c0_i32, %c0_i32_0 : i32, i32
  }
  func.func @transform_7(%arg0: i32) -> (i32, i32) {
    %c0_i32 = arith.constant 0 : i32
    %c0_i32_0 = arith.constant 0 : i32
    return %arg0, %c0_i32 : i32, i32
  }
}

</mosaic_0001>

<bundles_post_ra>
// kernel: tpu_custom_call.1
= control target key start
LH: loop header
LB: loop body
LE: loop exit
PB: predicated region body
PF: predicated region fallthrough
CT: control target
= control target key end

     0   :  { %12 = vsyncpa [#allocation3], 0  ;;  %s577_s0 = inlined_call_operand.vmem [shape: f32[8,4], index: 0, kind: input, shape index: {}]   ;;  %s578_s1 = inlined_call_operand.vmem [shape: f32[4,32], index: 1, kind: input, shape index: {}]   ;;  %s579_s2 = inlined_call_operand.vmem [shape: f32[1,32], index: 2, kind: input, shape index: {}]   ;;  %s580_s3 = inlined_call_operand.hbm [shape: f32[32,32], index: 3, kind: input, shape index: {}]   ;;  %s581_s4 = inlined_call_operand.vmem [shape: f32[1,32], index: 4, kind: input, shape index: {}]   ;;  %s582_s5 = inlined_call_operand.hbm [shape: f32[32,32], index: 5, kind: input, shape index: {}]   ;;  %s583_s6 = inlined_call_operand.vmem [shape: f32[1,32], index: 6, kind: input, shape index: {}]   ;;  %s584_s7 = inlined_call_operand.hbm [shape: f32[8,32], index: 7, kind: output, shape index: {}]  }
   0x1   :  { %13 = vsyncpa [#allocation6], 0 }
   0x2   :  { %14 = vsyncpa [#allocation4], 0  ;;  %s475_s24 = smov [#allocation2]   ;;  %s403_s28 = scalar_lea.hbm %s580_s3, 512 }
   0x3   :  { %s26_s25 = sshll.u32 %s475_s24, 4  ;;  %p404_p0 = scmp.ne.s32.totalorder %s580_s3, %s403_s28  ;;  %s27_s25 = int_to_ptr.vmem [resolvable:$true] %s26_s25 }
   0x4   :  { %p407_p1 = scmp.lt.u32.totalorder %s403_s28, %s580_s3 }
   0x6   :  { %p409_p2 = pnand %p407_p1, %p404_p0 }
   0x8   :  { %412 = shalt.err (!%p409_p2)
}
   0x9   :  { %s413_s10 = scalar_lea.vmem %s27_s25, 512  ;;  %p418_p4 = scmp.lt.s32.totalorder %s27_s25, %s27_s25 }
   0xa   :  { %p414_p3 = scmp.ne.s32.totalorder %s27_s25, %s413_s10  ;;  %p419_p5 = scmp.lt.s32.totalorder %s413_s10, %s413_s10 }
   0xc   :  { %p420_p6 = por %p419_p5, %p418_p4 }
   0xe   :  { %p421_p7 = pnand %p420_p6, %p414_p3 }
  0x10   :  { %424 = shalt.err (!%p421_p7)
}
  0x11   :  { %s476_s11 = smov 128   ;;  %s477_s12 = smov 8  }
  0x12   :  { %32 = dma.hbm_to_vmem [thread:$0]  %s580_s3, 512, %s27_s25, [#allocation3], %s476_s11, %s476_s11, %s477_s12  }
  0x13   :  { %s478_s15 = smov [#allocation5]   ;;  %s425_s19 = scalar_lea.hbm %s582_s5, 512 }
  0x14   :  { %s40_s16 = sshll.u32 %s478_s15, 4  ;;  %p426_p8 = scmp.ne.s32.totalorder %s582_s5, %s425_s19  ;;  %s41_s16 = int_to_ptr.vmem [resolvable:$true] %s40_s16 }
  0x15   :  { %p429_p9 = scmp.lt.u32.totalorder %s425_s19, %s582_s5 }
  0x17   :  { %p431_p10 = pnand %p429_p9, %p426_p8 }
  0x19   :  { %434 = shalt.err (!%p431_p10)
}
  0x1a   :  { %s435_s24 = scalar_lea.vmem %s41_s16, 512  ;;  %p440_p12 = scmp.lt.s32.totalorder %s41_s16, %s41_s16 }
  0x1b   :  { %p436_p11 = scmp.ne.s32.totalorder %s41_s16, %s435_s24  ;;  %p441_p13 = scmp.lt.s32.totalorder %s435_s24, %s435_s24 }
  0x1d   :  { %p442_p0 = por %p441_p13, %p440_p12 }
  0x1f   :  { %p443_p1 = pnand %p442_p0, %p436_p11 }
  0x21   :  { %446 = shalt.err (!%p443_p1)
}
  0x22   :  { %46 = dma.hbm_to_vmem [thread:$0]  %s582_s5, 512, %s41_s16, [#allocation6], %s476_s11, %s476_s11, %s477_s12  }
  0x23   :  { %469 = dma.done.wait [#allocation3], 512  }
  0x24   :  { %470 = vsyncadd [#allocation3], 4294966784 }
  0x25   :  { %471 = dma.done.wait [#allocation6], 512  }
  0x26   :  { %472 = vsyncadd [#allocation6], 4294966784  ;;  %v479_v0 = vmov 0.0   ;;  %vm480_vm0 = vmmov 0   ;;  %vm68_vm1 = vcmask 1043456   ;;  %vm64_vm2 = vcmask 31744  }
  0x27   :  { %350 = vmatprep.subr.mxu0 %v479_v0  ;;  %352 = vmatprep.mubr.msk.f32.mxu0 %vm480_vm0, %v479_v0  ;;  %v56_v1 = vld [vmem:[%s578_s1] sm:$0xf]  ;;  %v144_v4 = vld [vmem:[#allocation2 + $0x8] sm:$0xff]  ;;  %v145_v5 = vld [vmem:[#allocation2 + $0x10] sm:$0xff]  ;;  %v481_v6 = vmov 0.0|0.0   ;;  %vm154_vm3 = vcmask 261120  }
  0x28   :  { %363 = vmatprep.mubr.msk.f32.mxu1 %vm480_vm0, %v479_v0  ;;  %v55_v2 = vld [vmem:[%s577_s0] sm:$0xff]  ;;  %351 = vmatpush3.msk.msra.mxu0 %vm68_vm1, %v56_v1  ;;  %v146_v8 = vld [vmem:[#allocation2 + $0x18] sm:$0xff]  ;;  %v230_v16 = vld [vmem:[#allocation5 + $0x8] sm:$0xff]  ;;  %s482_s9 = smov [#allocation7]  }
  0x29   :  { %353 = vmatmul.mubr.msk.f32.vlgmr.msra.gmra.mrb[0].mxu0 %vm64_vm2, %v55_v2  ;;  %v143_v3 = vld [vmem:[#allocation2] sm:$0xff]  ;;  %377 = vmatprep.subr.bf16.mxu1 %v481_v6  ;;  %v381_v9 = vpack.c.bf16 %v146_v8, %v145_v5  ;;  %v231_v17 = vld [vmem:[#allocation5 + $0x10] sm:$0xff]  ;;  %v232_v19 = vld [vmem:[#allocation5 + $0x18] sm:$0xff]  ;;  %s321_s10 = sshll.u32 %s482_s9, 4  ;;  %s322_s10 = int_to_ptr.vmem [resolvable:$true] %s321_s10 }
  0x2a   :  { %374 = vmatprep.mubr.msk.f32.mxu0 %vm480_vm0, %v479_v0  ;;  %v378_v7 = vpack.c.bf16 %v144_v4, %v143_v3  ;;  %383 = vmatprep.subr.bf16.mxu0 %v481_v6  ;;  %v331_v10 = vld [vmem:[%s579_s2] ss:$0 sm:$0xff]  ;;  %v387_v20 = vpack.c.bf16 %v232_v19, %v231_v17  ;;  %p452_p3 = scmp.lt.s32.totalorder %s322_s10, %s322_s10 }
  0x2b   :  { %v229_v15 = vld [vmem:[#allocation5] sm:$0xff] }
  0x2c   :  { %379 = vmatpush3.bf16.msra.mxu1 %v378_v7  ;;  %v384_v18 = vpack.c.bf16 %v230_v16, %v229_v15  ;;  %v334_v21 = vld [vmem:[%s581_s4] ss:$0 sm:$0xff]  ;;  %s447_s4 = scalar_lea.vmem %s322_s10, 128 }
  0x2d   :  { %380 = vmatprep.subr.bf16.mxu1 %v481_v6  ;;  %v336_v26 = vld [vmem:[%s583_s6] ss:$0 sm:$0xff]  ;;  %p448_p2 = scmp.ne.s32.totalorder %s322_s10, %s447_s4  ;;  %p453_p4 = scmp.lt.s32.totalorder %s447_s4, %s447_s4 }
  0x2e   :  { %385 = vmatpush3.bf16.msra.mxu0 %v384_v18 }
  0x2f   :  { %386 = vmatprep.subr.bf16.mxu0 %v481_v6  ;;  %p454_p5 = por %p453_p4, %p452_p3 }
  0x30   :  { %382 = vmatpush3.bf16.msra.mxu1 %v381_v9 }
  0x31   :  { %p455_p6 = pnand %p454_p5, %p448_p2 }
  0x32   :  { %388 = vmatpush3.bf16.msra.mxu0 %v387_v20 }
  0xfc   :  { %v138_v11 = vpop.f32.mrb[0].mxu0 }
  0xfd   :  { %v139_v12 = vadd.f32 %v331_v10, %v138_v11  ;;  %v354_v13 = vpop.f32.mrb[1].mxu0 }
  0xff   :  { %397 = vtanh.f32 %v139_v12 }
 0x109   :  { %v398_v14 = vpop.eup %397 }
 0x10a   :  { %364 = vmatmul.mubr.msk.f32.vlgmr.msra.gmra.mrb[0].mxu1 %vm154_vm3, %v398_v14 }
 0x1dd   :  { %v224_v22 = vpop.f32.mrb[0].mxu1 }
 0x1de   :  { %v225_v23 = vadd.f32 %v334_v21, %v224_v22  ;;  %v365_v24 = vpop.f32.mrb[1].mxu1 }
 0x1e0   :  { %399 = vtanh.f32 %v225_v23 }
 0x1ea   :  { %v400_v25 = vpop.eup %399 }
 0x1eb   :  { %375 = vmatmul.mubr.msk.f32.vlgmr.msra.gmra.mrb[2].mxu0 %vm154_vm3, %v400_v25 }
 0x2be   :  { %v309_v27 = vpop.f32.mrb[2].mxu0 }
 0x2bf   :  { %v310_v28 = vadd.f32 %v336_v26, %v309_v27  ;;  %v376_v29 = vpop.f32.mrb[3].mxu0 }
 0x2c1   :  { %401 = vtanh.f32 %v310_v28 }
 0x2cb   :  { %v402_v30 = vpop.eup %401 }
 0x2cc   :  { %314 = vst.msk [vmem:[#allocation7] sm:$0xff] %vm154_vm3, %v402_v30 }
 0x2cd   :  { %458 = shalt.err (!%p455_p6)
}
 0x2ce   :  { %s459_s6 = scalar_lea.hbm %s584_s7, 128 }
 0x2cf   :  { %p460_p7 = scmp.ne.s32.totalorder %s584_s7, %s459_s6  ;;  %p463_p8 = scmp.lt.u32.totalorder %s459_s6, %s584_s7 }
 0x2d1   :  { %p465_p9 = pnand %p463_p8, %p460_p7 }
 0x2d3   :  { %468 = shalt.err (!%p465_p9)
}
 0x2d4   :  { %324 = dma.vmem_to_hbm [thread:$0]  %s322_s10, 128, %s584_s7, [#allocation4]  }
 0x2d5   :  { %473 = dma.done.wait [#allocation4], 128  }
 0x2d6   :  { %474 = vsyncadd [#allocation4], 4294967168 }
 0x2d7   :  { %328 = vsyncpa [#allocation3], 1 }
 0x2d8   :  { %329 = vsyncpa [#allocation6], 1 }
 0x2d9   :  { %330 = vsyncpa [#allocation4], 1 }

</bundles_post_ra>
